<compile_context>
chip_gen: v7x
topology: tpu7x:2x2x1
jax: 0.10.0
libtpu: 0.0.40
codegen_flags: <defaults>
</compile_context>

<pallas_src>
import jax
import jax.numpy as jnp
from jax.experimental import pallas as pl
from jax.experimental.pallas import tpu as pltpu

NEG_SLOPE = 0.2  # GATConv default LeakyReLU slope


# --------------------------- per-generation config ---------------------------

_CONFIG = None


def _cfg():
    """Pick row-tile size, scoped-VMEM limit and activation dtype per TPU generation."""
    global _CONFIG
    if _CONFIG is None:
        kind = ""
        try:
            kind = jax.devices()[0].device_kind.lower()
        except Exception:
            pass
        if "v7" in kind:          # 64 MiB VMEM, bf16-native VPU
            _CONFIG = dict(max_row_tile=1024, vmem_limit=48 * 1024 * 1024,
                           act_dtype=jnp.bfloat16)
        elif "v6" in kind:        # 128 MiB VMEM, bf16-native VPU
            _CONFIG = dict(max_row_tile=2048, vmem_limit=96 * 1024 * 1024,
                           act_dtype=jnp.bfloat16)
        elif "v5 lite" in kind or "v5e" in kind or "v5lite" in kind:
            # 128 MiB VMEM, but no bf16 VPU -> keep f32 activations (no cast cost)
            _CONFIG = dict(max_row_tile=2048, vmem_limit=96 * 1024 * 1024,
                           act_dtype=jnp.float32)
        else:                     # unknown / older chip: conservative & f32
            _CONFIG = dict(max_row_tile=1024, vmem_limit=48 * 1024 * 1024,
                           act_dtype=jnp.float32)
    return _CONFIG


def _act_dtype():
    return _cfg()["act_dtype"]


def _row_tile(n):
    # Full-extent block (always legal) when the array fits in one tile; otherwise
    # a multiple-of-8 row tile with a cdiv grid (ragged last block -> masked stores).
    m = _cfg()["max_row_tile"]
    return n if n <= m else m


def _row_cparams():
    return pltpu.CompilerParams(
        dimension_semantics=("parallel",),   # shard row tiles across TCs (v7x)
        vmem_limit_bytes=_cfg()["vmem_limit"],
    )


# ----------------------------- Pallas kernels ------------------------------

def _make_proj_kernel(n_slots):
    """x read once per node type; one MXU dot per (relation, role) slot emits that
    slot's dense h output, plus one narrow dot for all folded attention columns."""
    def kernel(*refs):
        x_ref = refs[0]
        wh_refs = refs[1:1 + n_slots]
        wa_ref = refs[1 + n_slots]
        h_refs = refs[2 + n_slots:2 + 2 * n_slots]
        a_ref = refs[2 + 2 * n_slots]
        x = x_ref[...].astype(jnp.bfloat16)   # MXU is bf16-native on every generation
        for s in range(n_slots):
            h = jnp.dot(x, wh_refs[s][...], preferred_element_type=jnp.float32)
            h_refs[s][...] = h.astype(h_refs[s].dtype)
        a_ref[...] = jnp.dot(x, wa_ref[...], preferred_element_type=jnp.float32)
    return kernel


def proj_all(x, w_h_list, w_a):
    """x: (N, F); w_h_list: n_slots x (F, C) bf16; w_a: (F, n_slots) bf16.
    Returns ([n_slots x (N, C) act], (N, n_slots) f32 alphas), tiled over N."""
    n, f = x.shape
    n_slots = len(w_h_list)
    c = w_h_list[0].shape[1]
    tile = _row_tile(n)
    act = _act_dtype()
    in_specs = [pl.BlockSpec((tile, f), lambda i: (i, 0))]
    # Grid-invariant weight blocks.  NOTE: pipeline_mode=pl.Buffered(1) (review's
    # v7x suggestion) is deliberately not set: the win is minor and single-buffer
    # pipeline_mode is not guaranteed to lower on every installed jax version.
    in_specs += [pl.BlockSpec((f, c), lambda i: (0, 0)) for _ in range(n_slots)]
    in_specs += [pl.BlockSpec((f, n_slots), lambda i: (0, 0))]
    out_specs = tuple(
        [pl.BlockSpec((tile, c), lambda i: (i, 0)) for _ in range(n_slots)]
        + [pl.BlockSpec((tile, n_slots), lambda i: (i, 0))])
    out_shape = tuple(
        [jax.ShapeDtypeStruct((n, c), act) for _ in range(n_slots)]
        + [jax.ShapeDtypeStruct((n, n_slots), jnp.float32)])
    res = pl.pallas_call(
        _make_proj_kernel(n_slots),
        grid=(pl.cdiv(n, tile),),
        in_specs=in_specs,
        out_specs=out_specs,
        out_shape=out_shape,
        compiler_params=_row_cparams(),
    )(x, *w_h_list, w_a)
    return list(res[:n_slots]), res[n_slots]


def _make_bias_act_kernel(apply_act):
    def kernel(x_ref, b_ref, o_ref):
        y = x_ref[...].astype(jnp.float32) + b_ref[...]
        if apply_act:
            y = jnp.maximum(y, 0.0)
        o_ref[...] = y.astype(o_ref.dtype)
    return kernel


def bias_act(agg, bias, apply_act):
    """Fused epilogue: aggregate + pre-summed bias (+ ReLU). agg:(N,C), bias:(1,C)."""
    n, c = agg.shape
    tile = _row_tile(n)
    return pl.pallas_call(
        _make_bias_act_kernel(apply_act),
        grid=(pl.cdiv(n, tile),),
        in_specs=[pl.BlockSpec((tile, c), lambda i: (i, 0)),
                  pl.BlockSpec((1, c), lambda i: (0, 0))],
        out_specs=pl.BlockSpec((tile, c), lambda i: (i, 0)),
        out_shape=jax.ShapeDtypeStruct((n, c), _act_dtype()),
        compiler_params=_row_cparams(),
    )(agg, bias)


def _node_score_kernel(x_ref, w_ref, o_ref):
    o_ref[...] = jnp.sum(x_ref[...].astype(jnp.float32) * w_ref[...],
                         axis=-1, keepdims=True)


def node_scores(x, w_row):
    """Row-wise dot products x @ w_row^T.  x:(N,C), w_row:(1,C) f32 -> (N,1) f32.
    The classifier heads only ever store these tiny per-node scores; the E-scale
    (E,d)/(E,1) lane-sparse stores flagged in the review no longer exist."""
    n, c = x.shape
    tile = _row_tile(n)
    return pl.pallas_call(
        _node_score_kernel,
        grid=(pl.cdiv(n, tile),),
        in_specs=[pl.BlockSpec((tile, c), lambda i: (i, 0)),
                  pl.BlockSpec((1, c), lambda i: (0, 0))],
        out_specs=pl.BlockSpec((tile, 1), lambda i: (i, 0)),
        out_shape=jax.ShapeDtypeStruct((n, 1), jnp.float32),
        compiler_params=_row_cparams(),
    )(x, w_row)


def _wcolsum_kernel(nrows_ref, w_ref, x_ref, o_ref):
    i = pl.program_id(0)

    @pl.when(i == 0)
    def _():
        o_ref[...] = jnp.zeros_like(o_ref)

    tile = w_ref.shape[0]
    row = i * tile + jax.lax.broadcasted_iota(jnp.int32, (tile, 1), 0)
    contrib = w_ref[...] * x_ref[...].astype(jnp.float32)
    contrib = jnp.where(row < nrows_ref[0], contrib, 0.0)  # mask ragged tail rows
    o_ref[...] += jnp.sum(contrib, axis=0, keepdims=True)


def weighted_colsum(weights, x):
    """sum_n weights[n] * x[n, :].  weights:(N,1) f32, x:(N,C) -> (1,C) f32."""
    n, c = x.shape
    tile = _row_tile(n)
    nrows = jnp.asarray([n], jnp.int32)
    return pl.pallas_call(
        _wcolsum_kernel,
        grid=(pl.cdiv(n, tile),),
        in_specs=[pl.BlockSpec(memory_space=pltpu.MemorySpace.SMEM),
                  pl.BlockSpec((tile, 1), lambda i: (i, 0)),
                  pl.BlockSpec((tile, c), lambda i: (i, 0))],
        out_specs=pl.BlockSpec((1, c), lambda i: (0, 0)),
        out_shape=jax.ShapeDtypeStruct((1, c), jnp.float32),
        compiler_params=pltpu.CompilerParams(
            dimension_semantics=("arbitrary",),   # accumulator output block
            vmem_limit_bytes=_cfg()["vmem_limit"]),
    )(nrows, weights, x)


# -------------------------- hetero GAT (to_hetero) -------------------------

def gat_conv_layer(x_dict, edge_index_dict, layer, apply_act):
    """One hetero GAT layer: a GATConv per relation; per-relation edge softmax;
    per destination node type ONE segment_sum over the concatenated messages of
    all incoming relations, followed by the fused bias(+ReLU) Pallas epilogue."""
    c = layer["out_dim"]
    act = _act_dtype()

    # 1) Fused projections: one pallas_call per node type (x read once).
    proj = {}
    for t, pk in layer["packed"].items():
        h_list, alpha = proj_all(x_dict[t], pk["w_h"], pk["w_a"])
        proj[t] = (h_list, alpha)

    # 2) Per-relation attention (1-D, E-length) + per-dst-type message lists.
    # TODO(synk): the edge-wise softmax / gather / scatter below is data-dependent
    # and stays as XLA segment-op glue; the remaining big win is a sorted-edge CSR
    # kernel (PrefetchScalarGridSpec with dst-offset scalar prefetch) that gathers
    # h_src rows, applies LeakyReLU + online softmax and accumulates per dst tile
    # entirely in VMEM.
    msgs = {t: [] for t in x_dict}
    idxs = {t: [] for t in x_dict}
    for rel in layer["relations"]:
        if rel not in edge_index_dict:
            continue
        src_t, _, dst_t = rel
        src_idx, dst_idx = edge_index_dict[rel]
        s_slot = layer["packed"][src_t]["slots"][(rel, "src")]
        d_slot = layer["packed"][dst_t]["slots"][(rel, "dst")]
        h_src = proj[src_t][0][s_slot]           # (N_src, C) dense, no lane slicing
        alpha_s = proj[src_t][1][:, s_slot]      # (N_src,)
        alpha_d = proj[dst_t][1][:, d_slot]      # (N_dst,)
        n_dst = x_dict[dst_t].shape[0]
        scores = alpha_s[src_idx] + alpha_d[dst_idx]
        scores = jnp.where(scores >= 0, scores, NEG_SLOPE * scores)   # LeakyReLU
        m = jax.ops.segment_max(scores, dst_idx, num_segments=n_dst)
        e = jnp.exp(scores - m[dst_idx])
        denom = jax.ops.segment_sum(e, dst_idx, num_segments=n_dst)
        attn = (e / denom[dst_idx]).astype(act)
        msgs[dst_t].append(attn[:, None] * jnp.take(h_src, src_idx, axis=0))
        idxs[dst_t].append(dst_idx)

    # 3) ONE segment_sum per destination node type + fused bias/ReLU epilogue.
    out = {}
    for t in x_dict:
        n_t = x_dict[t].shape[0]
        if msgs[t]:
            all_msg = msgs[t][0] if len(msgs[t]) == 1 else jnp.concatenate(msgs[t], axis=0)
            all_idx = idxs[t][0] if len(idxs[t]) == 1 else jnp.concatenate(idxs[t], axis=0)
            agg = jax.ops.segment_sum(all_msg, all_idx, num_segments=n_t)
            out[t] = bias_act(agg, layer["bias_sum"][t], apply_act)
        else:
            # TODO(synk): PyG to_hetero drops / passes through node types that are
            # never a message destination; zeros kept from the reference port.
            out[t] = jnp.zeros((n_t, c), act)
    return out


class LinkPredictorPallas:
    """JAX/Pallas equivalent of the PyTorch LinkPredictor forward pass."""

    def __init__(self, edge_type, edge_types, in_features,
                 classifier_type="linear", depth=3, seed=0):
        assert classifier_type in ("linear", "similarity")
        self.edge_type = edge_type
        self.classification_type = classifier_type
        self.depth = depth
        hidden = in_features * 2
        out_channels = 16
        dims = [in_features] + [hidden] * (depth - 1) + [out_channels]

        node_types = []
        for rel in edge_types:
            for t in (rel[0], rel[2]):
                if t not in node_types:
                    node_types.append(t)

        key = jax.random.PRNGKey(seed)
        self.layers = []
        for l in range(depth):
            fin, fout = dims[l], dims[l + 1]
            rel_params = {}
            for rel in edge_types:
                key, k1, k2, k3, k4, k5 = jax.random.split(key, 6)
                rel_params[rel] = dict(
                    w_src=0.1 * jax.random.normal(k1, (fin, fout), jnp.float32),
                    w_dst=0.1 * jax.random.normal(k2, (fin, fout), jnp.float32),
                    a_src=0.1 * jax.random.normal(k3, (1, fout), jnp.float32),
                    a_dst=0.1 * jax.random.normal(k4, (1, fout), jnp.float32),
                    bias=0.01 * jax.random.normal(k5, (1, fout), jnp.float32),
                )
            # Pack, per node type, one projection per (relation, role) slot plus
            # the folded attention columns W @ a^T.  Weights stored bf16 (the
            # kernels accumulate in f32).
            packed = {}
            for t in node_types:
                w_h, wa_cols, slots = [], [], {}
                for rel in edge_types:
                    p = rel_params[rel]
                    if rel[0] == t:                       # t is the source of rel
                        slots[(rel, "src")] = len(w_h)
                        w_h.append(p["w_src"])
                        wa_cols.append(p["w_src"] @ p["a_src"].T)
                    if rel[2] == t:                       # t is the destination
                        slots[(rel, "dst")] = len(w_h)
                        w_h.append(p["w_dst"])
                        wa_cols.append(p["w_dst"] @ p["a_dst"].T)
                if w_h:
                    packed[t] = dict(
                        w_h=[w.astype(jnp.bfloat16) for w in w_h],
                        w_a=jnp.concatenate(wa_cols, axis=1).astype(jnp.bfloat16),
                        slots=slots)
            # Pre-sum biases per destination node type (constant fold).
            bias_sum = {}
            for t in node_types:
                bs = [rel_params[rel]["bias"] for rel in edge_types if rel[2] == t]
                if bs:
                    b = bs[0]
                    for extra in bs[1:]:
                        b = b + extra
                    bias_sum[t] = b
            self.layers.append(dict(relations=list(edge_types), packed=packed,
                                    bias_sum=bias_sum, out_dim=fout))

        key, kw, kb = jax.random.split(key, 3)
        self.out_channels = out_channels
        self.cls_w = 0.1 * jax.random.normal(kw, (2 * out_channels, 1), jnp.float32)
        self.cls_b = 0.01 * jax.random.normal(kb, (1, 1), jnp.float32)

    def __call__(self, x_dict, edge_index_dict, edge_label_index):
        emb = x_dict
        for l, layer in enumerate(self.layers):
            emb = gat_conv_layer(emb, edge_index_dict, layer,
                                 apply_act=(l < self.depth - 1))
        src = edge_label_index[0]
        dst = edge_label_index[1]
        emb_s = emb[self.edge_type[0]]
        emb_d = emb[self.edge_type[2]]
        d = self.out_channels
        if self.classification_type == "linear":
            # sigmoid(concat(src_emb, dst_emb) @ W + b)
            #   == sigmoid((emb_s @ ws)[src] + (emb_d @ wd)[dst] + b)
            # -> node-level Pallas matvecs + E-length 1-D gathers; no (E, d) arrays.
            ws = self.cls_w[:d, 0].reshape(1, d)
            wd = self.cls_w[d:, 0].reshape(1, d)
            u = node_scores(emb_s, ws)[:, 0]
            v = node_scores(emb_d, wd)[:, 0]
            logits = u[src] + v[dst] + self.cls_b[0, 0]   # tiny 1-D XLA glue
            predictions = jax.nn.sigmoid(logits)
        else:
            # (emb_s[src] @ emb_d[dst].T).sum(-1) == (emb_s @ s)[src] with
            # s = sum_e emb_d[dst_e] = sum_n count[n] * emb_d[n]  -> node-level.
            count = jax.ops.segment_sum(
                jnp.ones(dst.shape, jnp.float32), dst,
                num_segments=emb_d.shape[0]).reshape(-1, 1)
            s = weighted_colsum(count, emb_d)             # (1, d) f32
            u = node_scores(emb_s, s)[:, 0]
            predictions = u[src]
        return predictions, emb  # (predictions, EmbeddingSpace.embed_dict)


# --------------------------------- main -------------------------------------

if __name__ == "__main__":
    key = jax.random.PRNGKey(0)
    NU, NI, F = 16, 16, 8      # num users, num items, in_features
    E, EL = 32, 8              # message-passing edges, label edges

    key, k1, k2, k3, k4, k5, k6 = jax.random.split(key, 7)
    x_user = jax.random.normal(k1, (NU, F), jnp.float32)
    x_item = jax.random.normal(k2, (NI, F), jnp.float32)
    ei_rates = jnp.stack([jax.random.randint(k3, (E,), 0, NU),
                          jax.random.randint(k4, (E,), 0, NI)]).astype(jnp.int32)
    ei_rev = jnp.stack([ei_rates[1], ei_rates[0]])
    edge_label_index = jnp.stack([jax.random.randint(k5, (EL,), 0, NU),
                                  jax.random.randint(k6, (EL,), 0, NI)]).astype(jnp.int32)

    edge_type = ("user", "rates", "item")
    rev_type = ("item", "rev_rates", "user")
    x_dict = {"user": x_user, "item": x_item}
    edge_index_dict = {edge_type: ei_rates, rev_type: ei_rev}

    model_lin = LinkPredictorPallas(edge_type, (edge_type, rev_type), F,
                                    classifier_type="linear", depth=3, seed=0)
    preds_lin, emb = model_lin(x_dict, edge_index_dict, edge_label_index)
    jax.block_until_ready(preds_lin)
    jax.block_until_ready(emb)
    assert preds_lin.shape == (EL,)
    assert emb["user"].shape == (NU, 16) and emb["item"].shape == (NI, 16)
    assert bool(jnp.all(jnp.isfinite(preds_lin)))

    model_sim = LinkPredictorPallas(edge_type, (edge_type, rev_type), F,
                                    classifier_type="similarity", depth=3, seed=0)
    preds_sim, _ = model_sim(x_dict, edge_index_dict, edge_label_index)
    jax.block_until_ready(preds_sim)
    assert preds_sim.shape == (EL,)
    assert bool(jnp.all(jnp.isfinite(preds_sim)))

    print("KERNEL_OK")
</pallas_src>

<mosaic_0001>
module attributes {stable_mosaic.version = 11 : i64} {
  func.func @kernel(%arg0: i32, %arg1: memref<16x8xf32, #tpu.memory_space<vmem>>, %arg2: memref<8x16xbf16, #tpu.memory_space<vmem>>, %arg3: memref<8x16xbf16, #tpu.memory_space<vmem>>, %arg4: memref<8x2xbf16, #tpu.memory_space<vmem>>, %arg5: memref<16x16xf32, #tpu.memory_space<vmem>>, %arg6: memref<16x16xf32, #tpu.memory_space<vmem>>, %arg7: memref<16x2xf32, #tpu.memory_space<vmem>>) attributes {dimension_semantics = [#tpu.dimension_semantics<parallel>], iteration_bounds = array<i64: 1>, scalar_prefetch = 0 : i64, scratch_operands = 0 : i64, tpu.core_type = #tpu.core_type<tc>, window_params = [{transform_indices = @transform_0, window_bounds = array<i64: 16, 8>}, {pipeline_mode = #tpu.pipeline_mode<synchronous>, transform_indices = @transform_1, window_bounds = array<i64: 8, 16>}, {pipeline_mode = #tpu.pipeline_mode<synchronous>, transform_indices = @transform_2, window_bounds = array<i64: 8, 16>}, {pipeline_mode = #tpu.pipeline_mode<synchronous>, transform_indices = @transform_3, window_bounds = array<i64: 8, 2>}, {transform_indices = @transform_4, window_bounds = array<i64: 16, 16>}, {transform_indices = @transform_5, window_bounds = array<i64: 16, 16>}, {transform_indices = @transform_6, window_bounds = array<i64: 16, 2>}]} {
    %c0 = arith.constant 0 : index
    %c0_0 = arith.constant 0 : index
    %0 = vector.load %arg1[%c0, %c0_0] : memref<16x8xf32, #tpu.memory_space<vmem>>, vector<16x8xf32>
    %1 = arith.truncf %0 : vector<16x8xf32> to vector<16x8xbf16>
    %c0_1 = arith.constant 0 : index
    %c0_2 = arith.constant 0 : index
    %2 = vector.load %arg2[%c0_1, %c0_2] : memref<8x16xbf16, #tpu.memory_space<vmem>>, vector<8x16xbf16>
    %cst = arith.constant dense<0.000000e+00> : vector<16x16xf32>
    %3 = tpu.matmul %1, %2, %cst {dimension_numbers = #tpu.dot_dimension_numbers<[1], [0], [0], [1], [0, 0, 1, 1], [], []>} : vector<16x8xbf16>, vector<8x16xbf16>, vector<16x16xf32> -> vector<16x16xf32>
    %c0_3 = arith.constant 0 : index
    %c0_4 = arith.constant 0 : index
    %4 = vector.load %arg5[%c0_3, %c0_4] : memref<16x16xf32, #tpu.memory_space<vmem>>, vector<16x16xf32>
    tpu.vector_store %arg5[%c0_3, %c0_4], %3 {strides = array<i32>} : memref<16x16xf32, #tpu.memory_space<vmem>>, vector<16x16xf32>,
    %c0_5 = arith.constant 0 : index
    %c0_6 = arith.constant 0 : index
    %5 = vector.load %arg3[%c0_5, %c0_6] : memref<8x16xbf16, #tpu.memory_space<vmem>>, vector<8x16xbf16>
    %cst_7 = arith.constant dense<0.000000e+00> : vector<16x16xf32>
    %6 = tpu.matmul %1, %5, %cst_7 {dimension_numbers = #tpu.dot_dimension_numbers<[1], [0], [0], [1], [0, 0, 1, 1], [], []>} : vector<16x8xbf16>, vector<8x16xbf16>, vector<16x16xf32> -> vector<16x16xf32>
    %c0_8 = arith.constant 0 : index
    %c0_9 = arith.constant 0 : index
    %7 = vector.load %arg6[%c0_8, %c0_9] : memref<16x16xf32, #tpu.memory_space<vmem>>, vector<16x16xf32>
    tpu.vector_store %arg6[%c0_8, %c0_9], %6 {strides = array<i32>} : memref<16x16xf32, #tpu.memory_space<vmem>>, vector<16x16xf32>,
    %c0_10 = arith.constant 0 : index
    %c0_11 = arith.constant 0 : index
    %8 = vector.load %arg4[%c0_10, %c0_11] : memref<8x2xbf16, #tpu.memory_space<vmem>>, vector<8x2xbf16>
    %cst_12 = arith.constant dense<0.000000e+00> : vector<16x2xf32>
    %9 = tpu.matmul %1, %8, %cst_12 {dimension_numbers = #tpu.dot_dimension_numbers<[1], [0], [0], [1], [0, 0, 1, 1], [], []>} : vector<16x8xbf16>, vector<8x2xbf16>, vector<16x2xf32> -> vector<16x2xf32>
    %c0_13 = arith.constant 0 : index
    %c0_14 = arith.constant 0 : index
    %10 = vector.load %arg7[%c0_13, %c0_14] : memref<16x2xf32, #tpu.memory_space<vmem>>, vector<16x2xf32>
    tpu.vector_store %arg7[%c0_13, %c0_14], %9 {strides = array<i32>} : memref<16x2xf32, #tpu.memory_space<vmem>>, vector<16x2xf32>,
    return
  }
  func.func @transform_0(%arg0: i32) -> (i32, i32) {
    %c0_i32 = arith.constant 0 : i32
    %c0_i32_0 = arith.constant 0 : i32
    return %arg0, %c0_i32 : i32, i32
  }
  func.func @transform_1(%arg0: i32) -> (i32, i32) {
    %c0_i32 = arith.constant 0 : i32
    %c0_i32_0 = arith.constant 0 : i32
    %c0_i32_1 = arith.constant 0 : i32
    return %c0_i32, %c0_i32_0 : i32, i32
  }
  func.func @transform_2(%arg0: i32) -> (i32, i32) {
    %c0_i32 = arith.constant 0 : i32
    %c0_i32_0 = arith.constant 0 : i32
    %c0_i32_1 = arith.constant 0 : i32
    return %c0_i32, %c0_i32_0 : i32, i32
  }
  func.func @transform_3(%arg0: i32) -> (i32, i32) {
    %c0_i32 = arith.constant 0 : i32
    %c0_i32_0 = arith.constant 0 : i32
    %c0_i32_1 = arith.constant 0 : i32
    return %c0_i32, %c0_i32_0 : i32, i32
  }
  func.func @transform_4(%arg0: i32) -> (i32, i32) {
    %c0_i32 = arith.constant 0 : i32
    %c0_i32_0 = arith.constant 0 : i32
    return %arg0, %c0_i32 : i32, i32
  }
  func.func @transform_5(%arg0: i32) -> (i32, i32) {
    %c0_i32 = arith.constant 0 : i32
    %c0_i32_0 = arith.constant 0 : i32
    return %arg0, %c0_i32 : i32, i32
  }
  func.func @transform_6(%arg0: i32) -> (i32, i32) {
    %c0_i32 = arith.constant 0 : i32
    %c0_i32_0 = arith.constant 0 : i32
    return %arg0, %c0_i32 : i32, i32
  }
}

</mosaic_0001>

<bundles_post_ra>
// kernel: tpu_custom_call.1
= control target key start
LH: loop header
LB: loop body
LE: loop exit
PB: predicated region body
PF: predicated region fallthrough
CT: control target
= control target key end

     0   :  { %12 = vsyncpa [#allocation3], 0  ;;  %vm31_vm0 = vcmask 1043456   ;;  %v291_v2 = vmov 0.0   ;;  %vm292_vm1 = vmmov 0   ;;  %vm27_vm2 = vcmask 64512   ;;  %s403_s0 = inlined_call_operand.vmem [shape: f32[16,8], index: 0, kind: input, shape index: {}]   ;;  %s404_s1 = inlined_call_operand.vmem [shape: bf16[8,16], index: 1, kind: input, shape index: {}]   ;;  %s405_s2 = inlined_call_operand.vmem [shape: bf16[8,16], index: 2, kind: input, shape index: {}]   ;;  %s406_s3 = inlined_call_operand.vmem [shape: bf16[8,2], index: 3, kind: input, shape index: {}]   ;;  %s407_s4 = inlined_call_operand.hbm [shape: f32[16,16], index: 4, kind: output, shape index: {0}]   ;;  %s408_s5 = inlined_call_operand.hbm [shape: f32[16,16], index: 5, kind: output, shape index: {1}]   ;;  %s409_s6 = inlined_call_operand.vmem [shape: f32[16,2], index: 6, kind: output, shape index: {2}]  }
   0x1   :  { %v26_v0 = vld [vmem:[%s404_s1] sm:$0xf]  ;;  %219 = vmatprep.subr.bf16.mxu0 %v291_v2  ;;  %221 = vmatprep.mubr.msk.bf16.mxu0 %vm292_vm1, %v291_v2  ;;  %v24_v4 = vld [vmem:[%s403_s0 + $0x8] sm:$0xff] }
   0x2   :  { %v23_v1 = vld [vmem:[%s403_s0] sm:$0xff]  ;;  %v33_v3 = vsel %vm31_vm0, %v26_v0, 0  ;;  %225 = vmatprep.subr.bf16.mxu1 %v291_v2 }
   0x3   :  { %v126_v5 = vld [vmem:[%s406_s3] sm:$0xf]  ;;  %220 = vmatpush3.bf16.msra.mxu0 %v33_v3  ;;  %v25_v6 = vpack.c.bf16 %v24_v4, %v23_v1 }
   0x4   :  { %v79_v7 = vld [vmem:[%s405_s2] sm:$0xf] }
   0x5   :  { %13 = vsyncpa [#allocation5], 0  ;;  %231 = vmatprep.subr.bf16.mxu0 %v291_v2  ;;  %v128_v8 = vsel %vm31_vm0, %v126_v5, 0  ;;  %v81_v9 = vsel %vm31_vm0, %v79_v7, 0  ;;  %227 = vmatprep.mubr.msk.bf16.mxu1 %vm292_vm1, %v291_v2  ;;  %s293_s0 = smov [#allocation2]   ;;  %vm76_vm3 = vcmask 130048  }
   0x6   :  { %226 = vmatpush3.bf16.msra.mxu1 %v81_v9  ;;  %222 = vmatmul.mubr.msk.bf16.vlgmr.msra.gmra.mrb[0].mxu0 %vm27_vm2, %v25_v6  ;;  %s179_s3 = sshll.u32 %s293_s0, 4  ;;  %s294_s2 = smov [#allocation4]   ;;  %s353_s3 = int_to_ptr.vmem [resolvable:$true] %s179_s3 }
   0x7   :  { %232 = vmatpush3.bf16.msra.mxu0 %v128_v8  ;;  %233 = vmatprep.mubr.msk.bf16.mxu0 %vm292_vm1, %v291_v2  ;;  %s191_s30 = sshll.u32 %s294_s2, 4  ;;  %s243_s7 = scalar_lea.vmem %s353_s3, 256  ;;  %s358_s30 = int_to_ptr.vmem [resolvable:$true] %s191_s30 }
   0x8   :  { %p244_p0 = scmp.ne.s32.totalorder %s353_s3, %s243_s7  ;;  %p248_p1 = scmp.lt.s32.totalorder %s353_s3, %s353_s3 }
   0x9   :  { %228 = vmatmul.mubr.msk.bf16.vlgmr.msra.gmra.mrb[0].mxu1 %vm27_vm2, %v25_v6  ;;  %p249_p2 = scmp.lt.s32.totalorder %s243_s7, %s243_s7 }
   0xb   :  { %p250_p3 = por %p249_p2, %p248_p1 }
   0xd   :  { %p251_p4 = pnand %p250_p3, %p244_p0 }
   0xe   :  { %234 = vmatmul.mubr.msk.bf16.vlgmr.msra.gmra.mrb[4].mxu0 %vm27_vm2, %v25_v6 }
  0xd9   :  { %v69_v10 = vpop.f32.mrb[0].mxu0 }
  0xda   :  { %77 = vst.msk [vmem:[#allocation2] sm:$0xff] %vm76_vm3, %v69_v10  ;;  %v223_v11 = vpop.f32.mrb[1].mxu0 }
  0xdb   :  { %v72_v12 = vpop.f32.mrb[2].mxu0 }
  0xdc   :  { %v117_v13 = vpop.f32.mrb[0].mxu1  ;;  %78 = vst.msk [vmem:[#allocation2 + $0x8] sm:$0xff] %vm76_vm3, %v72_v12  ;;  %v224_v14 = vpop.f32.mrb[3].mxu0 }
  0xdd   :  { %124 = vst.msk [vmem:[#allocation4] sm:$0xff] %vm76_vm3, %v117_v13  ;;  %v229_v15 = vpop.f32.mrb[1].mxu1 }
  0xde   :  { %v120_v16 = vpop.f32.mrb[2].mxu1 }
  0xdf   :  { %254 = shalt.err (!%p251_p4)
}
  0xe0   :  { %s255_s10 = scalar_lea.hbm %s407_s4, 256 }
  0xe1   :  { %p256_p5 = scmp.ne.s32.totalorder %s407_s4, %s255_s10  ;;  %p259_p6 = scmp.lt.u32.totalorder %s255_s10, %s407_s4 }
  0xe3   :  { %p261_p7 = pnand %p259_p6, %p256_p5 }
  0xe5   :  { %264 = shalt.err (!%p261_p7)
}
  0xe6   :  { %s295_s15 = smov 128   ;;  %s296_s16 = smov 8   ;;  %125 = vst.msk [vmem:[#allocation4 + $0x8] sm:$0xff] %vm76_vm3, %v120_v16  ;;  %v230_v17 = vpop.f32.mrb[3].mxu1  ;;  %vm171_vm4 = vcmask 15360  }
  0xe7   :  { %185 = dma.vmem_to_hbm [thread:$0]  %s353_s3, 256, %s407_s4, [#allocation3], %s295_s15, %s295_s15, %s296_s16  }
  0xe8   :  { %s265_s19 = scalar_lea.vmem %s358_s30, 256  ;;  %p270_p9 = scmp.lt.s32.totalorder %s358_s30, %s358_s30 }
  0xe9   :  { %p266_p8 = scmp.ne.s32.totalorder %s358_s30, %s265_s19  ;;  %p271_p10 = scmp.lt.s32.totalorder %s265_s19, %s265_s19 }
  0xeb   :  { %p272_p11 = por %p271_p10, %p270_p9 }
  0xed   :  { %p273_p12 = pnand %p272_p11, %p266_p8 }
  0xef   :  { %276 = shalt.err (!%p273_p12)
}
  0xf0   :  { %s277_s22 = scalar_lea.hbm %s408_s5, 256 }
  0xf1   :  { %p278_p13 = scmp.ne.s32.totalorder %s408_s5, %s277_s22  ;;  %p281_p0 = scmp.lt.u32.totalorder %s277_s22, %s408_s5 }
  0xf3   :  { %p283_p1 = pnand %p281_p0, %p278_p13 }
  0xf5   :  { %286 = shalt.err (!%p283_p1)
}
  0xf6   :  { %197 = dma.vmem_to_hbm [thread:$0]  %s358_s30, 256, %s408_s5, [#allocation5], %s295_s15, %s295_s15, %s296_s16   ;;  %v164_v18 = vpop.f32.mrb[4].mxu0 }
  0xf7   :  { %172 = vst.msk [vmem:[%s409_s6] sm:$0xff] %vm171_vm4, %v164_v18  ;;  %v235_v19 = vpop.f32.mrb[5].mxu0 }
  0xf8   :  { %v167_v20 = vpop.f32.mrb[6].mxu0 }
  0xf9   :  { %173 = vst.msk [vmem:[%s409_s6 + $0x8] sm:$0xff] %vm171_vm4, %v167_v20  ;;  %v236_v21 = vpop.f32.mrb[7].mxu0 }
  0xfa   :  { %287 = dma.done.wait [#allocation3], 256  }
  0xfb   :  { %288 = vsyncadd [#allocation3], 4294967040 }
  0xfc   :  { %289 = dma.done.wait [#allocation5], 256  }
  0xfd   :  { %290 = vsyncadd [#allocation5], 4294967040 }
  0xfe   :  { %208 = vsyncpa [#allocation3], 1 }
  0xff   :  { %209 = vsyncpa [#allocation5], 1 }

</bundles_post_ra>
